<compile_context>
chip_gen: v5e
topology: v5e:2x2
jax: 0.10.0
libtpu: 0.0.40
codegen_flags: <defaults>
</compile_context>

<pallas_src>
import functools
import math

import jax
import jax.numpy as jnp
from jax.experimental import pallas as pl
from jax.experimental.pallas import tpu as pltpu


# --------------------------------- kernel ------------------------------------

def critic_kernel(du_ref, dv_ref,
                  wdd_ref, wad_ref, b1d_ref,
                  w2d_ref, b2d_ref,
                  wc1d_ref, bc1d_ref,
                  wc2d_ref, bc2d_ref,
                  wc3r_ref,
                  out_ref, acc_ref,
                  *, m_valid, masked):
    s = pl.program_id(0)          # node-split axis (2nd TensorCore when B == 1)
    t = pl.program_id(2)          # node-tile reduction axis

    @pl.when(t == 0)
    def _init():
        acc_ref[...] = jnp.zeros_like(acc_ref)

    f32 = jnp.float32
    du = du_ref[...].astype(f32)                       # [TNF, fold*D]
    dv = dv_ref[...].astype(f32)                       # [TNF, fold*D]

    # Fused (depart_encoder | arrive_encoder | dist_map.Linear1) + ReLU on
    # fold-packed lanes (block-diagonal weights, 128 -> 256 lane-dense).
    h = jnp.dot(du, wdd_ref[...], preferred_element_type=f32)
    h = h + jnp.dot(dv, wad_ref[...], preferred_element_type=f32)
    h = jnp.maximum(h + b1d_ref[...], 0.0)                                      # [TNF, fold*H]

    # dist_map.Linear2, then the F.relu(dist_z.transpose(1, 2)) of the torch code.
    h = jnp.maximum(
        jnp.dot(h, w2d_ref[...], preferred_element_type=f32) + b2d_ref[...], 0.0)

    # conv1 / conv2 (1x1 convs == per-node matmuls) + ReLU.
    h = jnp.maximum(
        jnp.dot(h, wc1d_ref[...], preferred_element_type=f32) + bc1d_ref[...], 0.0)
    h = jnp.maximum(
        jnp.dot(h, wc2d_ref[...], preferred_element_type=f32) + bc2d_ref[...], 0.0)  # [TNF, fold*20]

    if masked:
        # Drop folded rows past the real node range (ragged last block and/or
        # core-split overshoot).  Select (not multiply) so garbage data is safe.
        tnf = du_ref.shape[0]
        g_tile = s * pl.num_programs(2) + t
        row = g_tile * tnf + jax.lax.broadcasted_iota(jnp.int32, (tnf, 1), 0)
        h = jnp.where(row < m_valid, h, 0.0)

    # conv3 + .sum(dim=2) is linear: only accumulate the node-row sum per tile.
    acc_ref[...] += jnp.sum(h, axis=0, keepdims=True)                            # [1, fold*20]

    @pl.when(t == pl.num_programs(2) - 1)
    def _finalize():
        # Tiny (fold*20) -> 1 contraction once per (split, batch).
        out_ref[...] = jnp.dot(acc_ref[...], wc3r_ref[...],
                               preferred_element_type=f32).astype(out_ref.dtype)


# -------------------------------- wrapper -------------------------------------

def critic_forward(dist_u, dist_v, params, svd_q, *, node_tile=8192):
    """dist_u, dist_v: [B, N, D] (D >= svd_q), f32 or bf16.  Returns [B, 1] f32."""
    B, N, D = dist_u.shape
    assert dist_v.shape == (B, N, D)
    assert D >= svd_q, "distance feature dim must be >= svd_q"
    H = params['w_de'].shape[0]

    # ---- host-side algebraic fusion (tiny, exact) ----------------------------
    w1_d = params['w1'][:, :H]                       # [H, H] acts on depart half
    w1_a = params['w1'][:, H:]                       # [H, H] acts on arrive half
    wd = jnp.zeros((D, H), jnp.float32).at[:svd_q].set((w1_d @ params['w_de']).T)
    wa = jnp.zeros((D, H), jnp.float32).at[:svd_q].set((w1_a @ params['w_ar']).T)
    b1c = params['b_de'] @ w1_d.T + params['b_ar'] @ w1_a.T + params['b1']      # [1, H]
    w2t, b2 = params['w2'].T, params['b2']           # [H, H], [1, H]
    wc1t, bc1 = params['wc1'].T, params['bc1']       # [H, 20], [1, 20]
    wc2t, bc2 = params['wc2'].T, params['bc2']       # [20, 20], [1, 20]
    wc3t, bc3 = params['wc3'].T, params['bc3']       # [20, 1], [1, 1]

    # ---- lane densification: pack `fold` nodes onto the lane axis ------------
    fold = int(max(1, min(128 // max(D, 1), 512 // max(H, 1)))) if D < 128 else 1
    n8 = ((N + fold - 1) // fold) * fold
    n_zero = n8 - N
    if n_zero:
        # TODO(synk): only hit when N % fold != 0; have producers pad N upstream
        # to avoid this extra HBM copy.
        pad = ((0, 0), (0, n_zero), (0, 0))
        dist_u = jnp.pad(dist_u, pad)
        dist_v = jnp.pad(dist_v, pad)
    m = n8 // fold                                    # folded node rows
    fd = fold * D
    du_f = dist_u.reshape(B, m, fd)                   # free row-major reshape
    dv_f = dist_v.reshape(B, m, fd)

    def bdiag(w):                                     # [cin,cout] -> [f*cin,f*cout]
        return jnp.kron(jnp.eye(fold, dtype=jnp.float32), w.astype(jnp.float32))

    def btile(b):                                     # [1,c] -> [1,f*c]
        return jnp.tile(b.astype(jnp.float32), (1, fold))

    weights = (bdiag(wd), bdiag(wa), btile(b1c),
               bdiag(w2t), btile(b2),
               bdiag(wc1t), btile(bc1),
               bdiag(wc2t), btile(bc2),
               jnp.tile(wc3t.astype(jnp.float32), (fold, 1)))   # sums fold slots

    # ---- node tiling / core split --------------------------------------------
    tnf_target = max(1, node_tile // fold)
    tnf = ((min(m, tnf_target) + 7) // 8) * 8         # sublane-aligned tile rows
    if tnf >= m:
        tnf = m                                       # single block == full dim
    num_tiles = -(-m // tnf)
    # v7x: when batch can't occupy both TensorCores, split node tiles across a
    # second parallel axis (negligible cost on single-TC v5e/v6e).
    splits = 2 if (B == 1 and num_tiles >= 2 and num_tiles % 2 == 0) else 1
    tps = num_tiles // splits
    masked = splits * tps * tnf != m

    in_spec = pl.BlockSpec((None, tnf, fd), lambda s, b, t: (b, s * tps + t, 0))

    def pspec(a):
        return pl.BlockSpec(a.shape, lambda s, b, t: (0, 0))

    partial_out = pl.pallas_call(
        functools.partial(critic_kernel, m_valid=m, masked=masked),
        out_shape=jax.ShapeDtypeStruct((splits, B, 1, 1), jnp.float32),
        grid=(splits, B, tps),
        in_specs=[in_spec, in_spec] + [pspec(w) for w in weights],
        out_specs=pl.BlockSpec((None, None, 1, 1), lambda s, b, t: (s, b, 0, 0)),
        scratch_shapes=[pltpu.VMEM((1, fold * 20), jnp.float32)],
        compiler_params=pltpu.CompilerParams(
            dimension_semantics=("parallel", "parallel", "arbitrary")),
    )(du_f, dv_f, *weights)

    out = jnp.sum(partial_out, axis=0).reshape(B, 1)

    # conv3 bias counted once per real node; zero-pad rows contributed a
    # constant relu-chain(0) vector which is corrected here (no per-tile mask).
    out = out + N * bc3.reshape(1, 1)
    if n_zero:
        h0 = jax.nn.relu(b1c)
        h0 = jax.nn.relu(h0 @ w2t + b2)
        h0 = jax.nn.relu(h0 @ wc1t + bc1)
        h0 = jax.nn.relu(h0 @ wc2t + bc2)
        out = out - n_zero * (h0 @ wc3t).reshape(1, 1)
    return out


# ----------------------------- params & reference -----------------------------

def _xavier_uniform(key, shape, fan_in, fan_out):
    bound = math.sqrt(6.0 / (fan_in + fan_out))
    return jax.random.uniform(key, shape, jnp.float32, -bound, bound)


def init_params(key, svd_q, hidden):
    keys = jax.random.split(key, 14)

    def layer(kw, kb, out_f, in_f):
        w = _xavier_uniform(kw, (out_f, in_f), in_f, out_f)
        bb = 1.0 / math.sqrt(in_f)
        b = jax.random.uniform(kb, (1, out_f), jnp.float32, -bb, bb)
        return w, b

    p = {}
    p['w_de'], p['b_de'] = layer(keys[0], keys[1], hidden, svd_q)        # depart encoder
    p['w_ar'], p['b_ar'] = layer(keys[2], keys[3], hidden, svd_q)        # arrive encoder
    p['w1'],  p['b1']  = layer(keys[4], keys[5], hidden, 2 * hidden)     # dist_map Linear 1
    p['w2'],  p['b2']  = layer(keys[6], keys[7], hidden, hidden)         # dist_map Linear 2
    p['wc1'], p['bc1'] = layer(keys[8], keys[9], 20, hidden)             # conv1 (1x1)
    p['wc2'], p['bc2'] = layer(keys[10], keys[11], 20, 20)               # conv2 (1x1)
    p['wc3'], p['bc3'] = layer(keys[12], keys[13], 1, 20)                # conv3 (1x1)
    return p


def critic_reference(dist_u, dist_v, p, svd_q):
    """Pure-JAX reference of the (unfused) PyTorch forward."""
    dx = dist_u[:, :, :svd_q]
    ax = dist_v[:, :, :svd_q]
    lin = lambda x, w, b: jnp.einsum('bnc,oc->bno', x, w) + b
    dz = lin(dx, p['w_de'], p['b_de'])
    az = lin(ax, p['w_ar'], p['b_ar'])
    z = jnp.concatenate([dz, az], axis=-1)
    h = jax.nn.relu(lin(z, p['w1'], p['b1']))
    h = lin(h, p['w2'], p['b2'])
    h = jax.nn.relu(h)
    h = jax.nn.relu(lin(h, p['wc1'], p['bc1']))
    h = jax.nn.relu(lin(h, p['wc2'], p['bc2']))
    y = lin(h, p['wc3'], p['bc3'])          # [B, N, 1]
    return jnp.sum(y, axis=1)               # [B, 1]


if __name__ == "__main__":
    B, N, D = 2, 16, 16       # batch, nodes, raw distance-feature dim
    SVD_Q, HIDDEN = 8, 32     # dist_encoder_params: input_size=8, hidden_size=32

    key = jax.random.PRNGKey(0)
    k_u, k_v, k_p, k_u2, k_v2 = jax.random.split(key, 5)
    dist_u = jax.random.normal(k_u, (B, N, D), jnp.float32)
    dist_v = jax.random.normal(k_v, (B, N, D), jnp.float32)
    params = init_params(k_p, SVD_Q, HIDDEN)

    out = jax.block_until_ready(critic_forward(dist_u, dist_v, params, SVD_Q))
    ref = critic_reference(dist_u, dist_v, params, SVD_Q)
    assert out.shape == (B, 1)
    assert jnp.allclose(out, ref, atol=1e-3, rtol=1e-3), (
        f"mismatch: max abs diff = {float(jnp.max(jnp.abs(out - ref)))}")

    # Second config: ragged node count, batch 1 — exercises the masked ragged
    # grid, the zero-pad constant correction and the dual-core node split.
    B2, N2 = 1, 1003
    du2 = jax.random.normal(k_u2, (B2, N2, D), jnp.float32)
    dv2 = jax.random.normal(k_v2, (B2, N2, D), jnp.float32)
    out2 = jax.block_until_ready(
        critic_forward(du2, dv2, params, SVD_Q, node_tile=256))
    ref2 = critic_reference(du2, dv2, params, SVD_Q)
    assert out2.shape == (B2, 1)
    assert jnp.allclose(out2, ref2, atol=5e-2, rtol=5e-3), (
        f"mismatch (ragged): max abs diff = {float(jnp.max(jnp.abs(out2 - ref2)))}")

    print("KERNEL_OK")
</pallas_src>

<mosaic_0001>
module attributes {stable_mosaic.version = 11 : i64} {
  func.func @critic_kernel(%arg0: i32, %arg1: i32, %arg2: i32, %arg3: memref<1x2x128xf32, #tpu.memory_space<vmem>>, %arg4: memref<1x2x128xf32, #tpu.memory_space<vmem>>, %arg5: memref<128x256xf32, #tpu.memory_space<vmem>>, %arg6: memref<128x256xf32, #tpu.memory_space<vmem>>, %arg7: memref<1x256xf32, #tpu.memory_space<vmem>>, %arg8: memref<256x256xf32, #tpu.memory_space<vmem>>, %arg9: memref<1x256xf32, #tpu.memory_space<vmem>>, %arg10: memref<256x160xf32, #tpu.memory_space<vmem>>, %arg11: memref<1x160xf32, #tpu.memory_space<vmem>>, %arg12: memref<160x160xf32, #tpu.memory_space<vmem>>, %arg13: memref<1x160xf32, #tpu.memory_space<vmem>>, %arg14: memref<160x1xf32, #tpu.memory_space<vmem>>, %arg15: memref<1x1x1x1xf32, #tpu.memory_space<vmem>>, %arg16: memref<1x160xf32, #tpu.memory_space<vmem>>) attributes {dimension_semantics = [#tpu.dimension_semantics<parallel>, #tpu.dimension_semantics<parallel>, #tpu.dimension_semantics<arbitrary>], iteration_bounds = array<i64: 1, 2, 1>, scalar_prefetch = 0 : i64, scratch_operands = 1 : i64, tpu.core_type = #tpu.core_type<tc>, window_params = [{transform_indices = @transform_0, window_bounds = array<i64: 1, 2, 128>}, {transform_indices = @transform_1, window_bounds = array<i64: 1, 2, 128>}, {pipeline_mode = #tpu.pipeline_mode<synchronous>, transform_indices = @transform_2, window_bounds = array<i64: 128, 256>}, {pipeline_mode = #tpu.pipeline_mode<synchronous>, transform_indices = @transform_3, window_bounds = array<i64: 128, 256>}, {pipeline_mode = #tpu.pipeline_mode<synchronous>, transform_indices = @transform_4, window_bounds = array<i64: 1, 256>}, {pipeline_mode = #tpu.pipeline_mode<synchronous>, transform_indices = @transform_5, window_bounds = array<i64: 256, 256>}, {pipeline_mode = #tpu.pipeline_mode<synchronous>, transform_indices = @transform_6, window_bounds = array<i64: 1, 256>}, {pipeline_mode = #tpu.pipeline_mode<synchronous>, transform_indices = @transform_7, window_bounds = array<i64: 256, 160>}, {pipeline_mode = #tpu.pipeline_mode<synchronous>, transform_indices = @transform_8, window_bounds = array<i64: 1, 160>}, {pipeline_mode = #tpu.pipeline_mode<synchronous>, transform_indices = @transform_9, window_bounds = array<i64: 160, 160>}, {pipeline_mode = #tpu.pipeline_mode<synchronous>, transform_indices = @transform_10, window_bounds = array<i64: 1, 160>}, {pipeline_mode = #tpu.pipeline_mode<synchronous>, transform_indices = @transform_11, window_bounds = array<i64: 160, 1>}, {transform_indices = @transform_12, window_bounds = array<i64: 1, 1, 1, 1>}]} {
    %c0_i32 = arith.constant 0 : i32
    %0 = arith.cmpi eq, %arg2, %c0_i32 : i32
    %1 = arith.extui %0 : i1 to i32
    %c0_i32_0 = arith.constant 0 : i32
    %2 = arith.cmpi ne, %1, %c0_i32_0 : i32
    scf.if %2 {
      %cst_39 = arith.constant 0.000000e+00 : f32
      %46 = vector.broadcast %cst_39 : f32 to vector<1x160xf32>
      %c0_40 = arith.constant 0 : index
      %c0_41 = arith.constant 0 : index
      %47 = vector.load %arg16[%c0_40, %c0_41] : memref<1x160xf32, #tpu.memory_space<vmem>>, vector<1x160xf32>
      tpu.vector_store %arg16[%c0_40, %c0_41], %46 {strides = array<i32>} : memref<1x160xf32, #tpu.memory_space<vmem>>, vector<1x160xf32>,
    } else {
    }
    %c0 = arith.constant 0 : index
    %c0_1 = arith.constant 0 : index
    %c0_2 = arith.constant 0 : index
    %3 = vector.load %arg3[%c0, %c0_1, %c0_2] : memref<1x2x128xf32, #tpu.memory_space<vmem>>, vector<1x2x128xf32>
    %4 = vector.shape_cast %3 : vector<1x2x128xf32> to vector<2x128xf32>
    %c0_3 = arith.constant 0 : index
    %c0_4 = arith.constant 0 : index
    %c0_5 = arith.constant 0 : index
    %5 = vector.load %arg4[%c0_3, %c0_4, %c0_5] : memref<1x2x128xf32, #tpu.memory_space<vmem>>, vector<1x2x128xf32>
    %6 = vector.shape_cast %5 : vector<1x2x128xf32> to vector<2x128xf32>
    %c0_6 = arith.constant 0 : index
    %c0_7 = arith.constant 0 : index
    %7 = vector.load %arg5[%c0_6, %c0_7] : memref<128x256xf32, #tpu.memory_space<vmem>>, vector<128x256xf32>
    %cst = arith.constant dense<0.000000e+00> : vector<2x256xf32>
    %8 = tpu.matmul %4, %7, %cst {dimension_numbers = #tpu.dot_dimension_numbers<[1], [0], [0], [1], [0, 0, 1, 1], [], []>} : vector<2x128xf32>, vector<128x256xf32>, vector<2x256xf32> -> vector<2x256xf32>
    %c0_8 = arith.constant 0 : index
    %c0_9 = arith.constant 0 : index
    %9 = vector.load %arg6[%c0_8, %c0_9] : memref<128x256xf32, #tpu.memory_space<vmem>>, vector<128x256xf32>
    %cst_10 = arith.constant dense<0.000000e+00> : vector<2x256xf32>
    %10 = tpu.matmul %6, %9, %cst_10 {dimension_numbers = #tpu.dot_dimension_numbers<[1], [0], [0], [1], [0, 0, 1, 1], [], []>} : vector<2x128xf32>, vector<128x256xf32>, vector<2x256xf32> -> vector<2x256xf32>
    %11 = arith.addf %8, %10 : vector<2x256xf32>
    %c0_11 = arith.constant 0 : index
    %c0_12 = arith.constant 0 : index
    %12 = vector.load %arg7[%c0_11, %c0_12] : memref<1x256xf32, #tpu.memory_space<vmem>>, vector<1x256xf32>
    %13 = vector.broadcast %12 : vector<1x256xf32> to vector<2x256xf32>
    %14 = arith.addf %11, %13 : vector<2x256xf32>
    %cst_13 = arith.constant 0.000000e+00 : f32
    %15 = vector.broadcast %cst_13 : f32 to vector<2x256xf32>
    %16 = arith.maximumf %14, %15 : vector<2x256xf32>
    %c0_14 = arith.constant 0 : index
    %c0_15 = arith.constant 0 : index
    %17 = vector.load %arg8[%c0_14, %c0_15] : memref<256x256xf32, #tpu.memory_space<vmem>>, vector<256x256xf32>
    %cst_16 = arith.constant dense<0.000000e+00> : vector<2x256xf32>
    %18 = tpu.matmul %16, %17, %cst_16 {dimension_numbers = #tpu.dot_dimension_numbers<[1], [0], [0], [1], [0, 0, 1, 1], [], []>} : vector<2x256xf32>, vector<256x256xf32>, vector<2x256xf32> -> vector<2x256xf32>
    %c0_17 = arith.constant 0 : index
    %c0_18 = arith.constant 0 : index
    %19 = vector.load %arg9[%c0_17, %c0_18] : memref<1x256xf32, #tpu.memory_space<vmem>>, vector<1x256xf32>
    %20 = vector.broadcast %19 : vector<1x256xf32> to vector<2x256xf32>
    %21 = arith.addf %18, %20 : vector<2x256xf32>
    %cst_19 = arith.constant 0.000000e+00 : f32
    %22 = vector.broadcast %cst_19 : f32 to vector<2x256xf32>
    %23 = arith.maximumf %21, %22 : vector<2x256xf32>
    %c0_20 = arith.constant 0 : index
    %c0_21 = arith.constant 0 : index
    %24 = vector.load %arg10[%c0_20, %c0_21] : memref<256x160xf32, #tpu.memory_space<vmem>>, vector<256x160xf32>
    %cst_22 = arith.constant dense<0.000000e+00> : vector<2x160xf32>
    %25 = tpu.matmul %23, %24, %cst_22 {dimension_numbers = #tpu.dot_dimension_numbers<[1], [0], [0], [1], [0, 0, 1, 1], [], []>} : vector<2x256xf32>, vector<256x160xf32>, vector<2x160xf32> -> vector<2x160xf32>
    %c0_23 = arith.constant 0 : index
    %c0_24 = arith.constant 0 : index
    %26 = vector.load %arg11[%c0_23, %c0_24] : memref<1x160xf32, #tpu.memory_space<vmem>>, vector<1x160xf32>
    %27 = vector.broadcast %26 : vector<1x160xf32> to vector<2x160xf32>
    %28 = arith.addf %25, %27 : vector<2x160xf32>
    %cst_25 = arith.constant 0.000000e+00 : f32
    %29 = vector.broadcast %cst_25 : f32 to vector<2x160xf32>
    %30 = arith.maximumf %28, %29 : vector<2x160xf32>
    %c0_26 = arith.constant 0 : index
    %c0_27 = arith.constant 0 : index
    %31 = vector.load %arg12[%c0_26, %c0_27] : memref<160x160xf32, #tpu.memory_space<vmem>>, vector<160x160xf32>
    %cst_28 = arith.constant dense<0.000000e+00> : vector<2x160xf32>
    %32 = tpu.matmul %30, %31, %cst_28 {dimension_numbers = #tpu.dot_dimension_numbers<[1], [0], [0], [1], [0, 0, 1, 1], [], []>} : vector<2x160xf32>, vector<160x160xf32>, vector<2x160xf32> -> vector<2x160xf32>
    %c0_29 = arith.constant 0 : index
    %c0_30 = arith.constant 0 : index
    %33 = vector.load %arg13[%c0_29, %c0_30] : memref<1x160xf32, #tpu.memory_space<vmem>>, vector<1x160xf32>
    %34 = vector.broadcast %33 : vector<1x160xf32> to vector<2x160xf32>
    %35 = arith.addf %32, %34 : vector<2x160xf32>
    %cst_31 = arith.constant 0.000000e+00 : f32
    %36 = vector.broadcast %cst_31 : f32 to vector<2x160xf32>
    %37 = arith.maximumf %35, %36 : vector<2x160xf32>
    %c0_32 = arith.constant 0 : index
    %c0_33 = arith.constant 0 : index
    %38 = vector.load %arg16[%c0_32, %c0_33] : memref<1x160xf32, #tpu.memory_space<vmem>>, vector<1x160xf32>
    %cst_34 = arith.constant dense<0.000000e+00> : vector<160xf32>
    %39 = vector.multi_reduction <add>, %37, %cst_34 [0] : vector<2x160xf32> to vector<160xf32>
    %40 = vector.shape_cast %39 : vector<160xf32> to vector<1x160xf32>
    %41 = arith.addf %38, %40 : vector<1x160xf32>
    %c0_35 = arith.constant 0 : index
    %c0_36 = arith.constant 0 : index
    %42 = vector.load %arg16[%c0_35, %c0_36] : memref<1x160xf32, #tpu.memory_space<vmem>>, vector<1x160xf32>
    tpu.vector_store %arg16[%c0_35, %c0_36], %41 {strides = array<i32>} : memref<1x160xf32, #tpu.memory_space<vmem>>, vector<1x160xf32>,
    %c0_i32_37 = arith.constant 0 : i32
    %43 = arith.cmpi eq, %arg2, %c0_i32_37 : i32
    %44 = arith.extui %43 : i1 to i32
    %c0_i32_38 = arith.constant 0 : i32
    %45 = arith.cmpi ne, %44, %c0_i32_38 : i32
    scf.if %45 {
      %c0_39 = arith.constant 0 : index
      %c0_40 = arith.constant 0 : index
      %46 = vector.load %arg16[%c0_39, %c0_40] : memref<1x160xf32, #tpu.memory_space<vmem>>, vector<1x160xf32>
      %c0_41 = arith.constant 0 : index
      %c0_42 = arith.constant 0 : index
      %47 = vector.load %arg14[%c0_41, %c0_42] : memref<160x1xf32, #tpu.memory_space<vmem>>, vector<160x1xf32>
      %cst_43 = arith.constant dense<0.000000e+00> : vector<1x1xf32>
      %48 = tpu.matmul %46, %47, %cst_43 {dimension_numbers = #tpu.dot_dimension_numbers<[1], [0], [0], [1], [0, 0, 1, 1], [], []>} : vector<1x160xf32>, vector<160x1xf32>, vector<1x1xf32> -> vector<1x1xf32>
      %c0_44 = arith.constant 0 : index
      %c0_45 = arith.constant 0 : index
      %c0_46 = arith.constant 0 : index
      %c0_47 = arith.constant 0 : index
      %49 = vector.load %arg15[%c0_44, %c0_45, %c0_46, %c0_47] : memref<1x1x1x1xf32, #tpu.memory_space<vmem>>, vector<1x1x1x1xf32>
      %50 = vector.shape_cast %49 : vector<1x1x1x1xf32> to vector<1x1xf32>
      %51 = vector.shape_cast %48 : vector<1x1xf32> to vector<1x1x1x1xf32>
      tpu.vector_store %arg15[%c0_44, %c0_45, %c0_46, %c0_47], %51 {strides = array<i32>} : memref<1x1x1x1xf32, #tpu.memory_space<vmem>>, vector<1x1x1x1xf32>,
    } else {
    }
    return
  }
  func.func @transform_0(%arg0: i32, %arg1: i32, %arg2: i32) -> (i32, i32, i32) {
    %c1_i32 = arith.constant 1 : i32
    %0 = arith.muli %arg0, %c1_i32 : i32
    %1 = arith.addi %0, %arg2 : i32
    %c0_i32 = arith.constant 0 : i32
    %c0_i32_0 = arith.constant 0 : i32
    return %arg1, %1, %c0_i32 : i32, i32, i32
  }
  func.func @transform_1(%arg0: i32, %arg1: i32, %arg2: i32) -> (i32, i32, i32) {
    %c1_i32 = arith.constant 1 : i32
    %0 = arith.muli %arg0, %c1_i32 : i32
    %1 = arith.addi %0, %arg2 : i32
    %c0_i32 = arith.constant 0 : i32
    %c0_i32_0 = arith.constant 0 : i32
    return %arg1, %1, %c0_i32 : i32, i32, i32
  }
  func.func @transform_2(%arg0: i32, %arg1: i32, %arg2: i32) -> (i32, i32) {
    %c0_i32 = arith.constant 0 : i32
    %c0_i32_0 = arith.constant 0 : i32
    %c0_i32_1 = arith.constant 0 : i32
    return %c0_i32, %c0_i32_0 : i32, i32
  }
  func.func @transform_3(%arg0: i32, %arg1: i32, %arg2: i32) -> (i32, i32) {
    %c0_i32 = arith.constant 0 : i32
    %c0_i32_0 = arith.constant 0 : i32
    %c0_i32_1 = arith.constant 0 : i32
    return %c0_i32, %c0_i32_0 : i32, i32
  }
  func.func @transform_4(%arg0: i32, %arg1: i32, %arg2: i32) -> (i32, i32) {
    %c0_i32 = arith.constant 0 : i32
    %c0_i32_0 = arith.constant 0 : i32
    %c0_i32_1 = arith.constant 0 : i32
    return %c0_i32, %c0_i32_0 : i32, i32
  }
  func.func @transform_5(%arg0: i32, %arg1: i32, %arg2: i32) -> (i32, i32) {
    %c0_i32 = arith.constant 0 : i32
    %c0_i32_0 = arith.constant 0 : i32
    %c0_i32_1 = arith.constant 0 : i32
    return %c0_i32, %c0_i32_0 : i32, i32
  }
  func.func @transform_6(%arg0: i32, %arg1: i32, %arg2: i32) -> (i32, i32) {
    %c0_i32 = arith.constant 0 : i32
    %c0_i32_0 = arith.constant 0 : i32
    %c0_i32_1 = arith.constant 0 : i32
    return %c0_i32, %c0_i32_0 : i32, i32
  }
  func.func @transform_7(%arg0: i32, %arg1: i32, %arg2: i32) -> (i32, i32) {
    %c0_i32 = arith.constant 0 : i32
    %c0_i32_0 = arith.constant 0 : i32
    %c0_i32_1 = arith.constant 0 : i32
    return %c0_i32, %c0_i32_0 : i32, i32
  }
  func.func @transform_8(%arg0: i32, %arg1: i32, %arg2: i32) -> (i32, i32) {
    %c0_i32 = arith.constant 0 : i32
    %c0_i32_0 = arith.constant 0 : i32
    %c0_i32_1 = arith.constant 0 : i32
    return %c0_i32, %c0_i32_0 : i32, i32
  }
  func.func @transform_9(%arg0: i32, %arg1: i32, %arg2: i32) -> (i32, i32) {
    %c0_i32 = arith.constant 0 : i32
    %c0_i32_0 = arith.constant 0 : i32
    %c0_i32_1 = arith.constant 0 : i32
    return %c0_i32, %c0_i32_0 : i32, i32
  }
  func.func @transform_10(%arg0: i32, %arg1: i32, %arg2: i32) -> (i32, i32) {
    %c0_i32 = arith.constant 0 : i32
    %c0_i32_0 = arith.constant 0 : i32
    %c0_i32_1 = arith.constant 0 : i32
    return %c0_i32, %c0_i32_0 : i32, i32
  }
  func.func @transform_11(%arg0: i32, %arg1: i32, %arg2: i32) -> (i32, i32) {
    %c0_i32 = arith.constant 0 : i32
    %c0_i32_0 = arith.constant 0 : i32
    %c0_i32_1 = arith.constant 0 : i32
    return %c0_i32, %c0_i32_0 : i32, i32
  }
  func.func @transform_12(%arg0: i32, %arg1: i32, %arg2: i32) -> (i32, i32, i32, i32) {
    %c0_i32 = arith.constant 0 : i32
    %c0_i32_0 = arith.constant 0 : i32
    %c0_i32_1 = arith.constant 0 : i32
    return %arg0, %arg1, %c0_i32, %c0_i32_0 : i32, i32, i32, i32
  }
}

</mosaic_0001>

<bundles_post_ra>
// kernel: tpu_custom_call.1
= control target key start
LH: loop header
LB: loop body
LE: loop exit
PB: predicated region body
PF: predicated region fallthrough
CT: control target
= control target key end

     0   :  { %17 = vsyncpa [#allocation4], 0  ;;  %s2228_s0 = inlined_call_operand.vmem [shape: f32[2,2,128], index: 0, kind: input, shape index: {}]   ;;  %s2229_s1 = inlined_call_operand.vmem [shape: f32[2,2,128], index: 1, kind: input, shape index: {}]   ;;  %s2230_s2 = inlined_call_operand.hbm [shape: f32[128,256], index: 2, kind: input, shape index: {}]   ;;  %s2231_s3 = inlined_call_operand.hbm [shape: f32[128,256], index: 3, kind: input, shape index: {}]   ;;  %s2232_s4 = inlined_call_operand.vmem [shape: f32[1,256], index: 4, kind: input, shape index: {}]   ;;  %s2233_s5 = inlined_call_operand.vmem [shape: f32[256,256], index: 5, kind: input, shape index: {}]   ;;  %s2234_s6 = inlined_call_operand.vmem [shape: f32[1,256], index: 6, kind: input, shape index: {}]   ;;  %s2235_s7 = inlined_call_operand.vmem [shape: f32[256,160], index: 7, kind: input, shape index: {}]   ;;  %s2236_s8 = inlined_call_operand.vmem [shape: f32[1,160], index: 8, kind: input, shape index: {}]   ;;  %s2237_s9 = inlined_call_operand.vmem [shape: f32[160,160], index: 9, kind: input, shape index: {}]   ;;  %s2238_s10 = inlined_call_operand.vmem [shape: f32[1,160], index: 10, kind: input, shape index: {}]   ;;  %s2239_s11 = inlined_call_operand.vmem [shape: f32[160,1], index: 11, kind: input, shape index: {}]   ;;  %s2240_s12 = inlined_call_operand.vmem [shape: f32[1,2,1,1], index: 12, kind: output, shape index: {}]  }
   0x1   :  { %18 = vsyncpa [#allocation6], 0  ;;  %s1566_s21 = smov 0   ;;  %s1568_s22 = smov 0  }
   0x2   :  { %s1570_s23 = smov 0  }
   0x3 LB: > { %s1340_s24 = sadd.s32 4294967295, %s1494_s23   ;;  %s39_s25 = sadd.s32 1, %s1490_s22  ;;  %s1494_s23 = sphi %s1570_s23, %s24_s23   ;;  %s1490_s22 = sphi %s1568_s22, %s2246_s22   ;;  %s1486_s21 = sphi %s1566_s21, %s2245_s21  }
   0x4   : > { %p41_p0 = scmp.ge.s32.totalorder %s39_s25, 2  ;;  %p1342_p1 = scmp.ge.s32.totalorder %s1494_s23, 1 }
   0x5   : > { %p346_p2 = scmp.lt.s32.totalorder %s1494_s23, 3  ;;  %p1591_p4 = scmp.eq.s32.totalorder %s1340_s24, 0 }
   0x6   : > { %s2248_s25 = smov (%p41_p0, %s39_s25), 0  ;;  %s357_s30 = sshll.u32 %s2230_s2, 4  ;;  %s358_s30 = int_to_ptr.hbm [resolvable:$true] %s357_s30 }
   0x7   : > { %p1587_p3 = pnand %p1342_p1, %p346_p2  ;;  %s1496_s13 = smov [#allocation3]  }
   0x8   : > { %s359_s14 = sshll.u32 %s1496_s13, 4  ;;  %s371_s17 = sshll.u32 %s2231_s3, 4  ;;  %s360_s14 = int_to_ptr.vmem [resolvable:$true] %s359_s14  ;;  %s372_s17 = int_to_ptr.hbm [resolvable:$true] %s371_s17 }
   0x9   : > { %p1364_p5 = pneg %p1587_p3  ;;  %s1497_s18 = smov 256  }
   0xa   : > { %s1498_s19 = smov 16   ;;  %s1499_s20 = smov [#allocation5]  }
   0xb   : > { %p1365_p6 = pnand %p1591_p4, %p1364_p5  ;;  %s373_s24 = sshll.u32 %s1499_s20, 4  ;;  %s374_s24 = int_to_ptr.vmem [resolvable:$true] %s373_s24 }
   0xc   : > { %437 = sbr.rel (%p1587_p3) target bundleno = 771 (0x303), region = 68 }
   0xd   : > { %1367 = dma.hbm_to_vmem [thread:$0]  (!%p1365_p6), %s358_s30, 4096, %s360_s14, [#allocation4], %s1497_s18, %s1497_s18, %s1498_s19  }
   0xe   : > { %1370 = dma.hbm_to_vmem [thread:$0]  (!%p1365_p6), %s372_s17, 4096, %s374_s24, [#allocation6], %s1497_s18, %s1497_s18, %s1498_s19  }
  0x11   : > { %1477 = dma.done.wait (%p1591_p4), [#allocation4], 4096  }
  0x12   : > { %1479 = vsyncadd (%p1591_p4), [#allocation4], 4294963200 }
  0x13   : > { %1481 = dma.done.wait (%p1591_p4), [#allocation6], 4096  }
  0x14   : > { %1483 = vsyncadd (%p1591_p4), [#allocation6], 4294963200  ;;  %v564_v0 = vld [vmem:[#allocation3 + $0xf0] sm:$0xff]  ;;  %v562_v1 = vld [vmem:[#allocation3 + $0xe0] sm:$0xff]  ;;  %p499_p7 = scmp.lt.s32.totalorder %s1486_s21, 1  ;;  %vm1038_vm0 = vcmask 261120  }
  0x15   : > { %v565_v2 = vld [vmem:[#allocation3 + $0xf8] sm:$0xff]  ;;  %638 = vmatpush.msra.mxu2 %v564_v0  ;;  %v563_v3 = vld [vmem:[#allocation3 + $0xe8] sm:$0xff]  ;;  %v596_v4 = vld [vmem:[#allocation5 + $0xf0] sm:$0xff]  ;;  %vm1125_vm2 = vcmask 1041408   ;;  %vm1133_vm3 = vcmask 254976   ;;  %vm1144_vm4 = vcmask 1040384  }
  0x16   : > { %658 = vmatpush.msra.mxu3 %v565_v2  ;;  %v560_v5 = vld [vmem:[#allocation3 + $0xd0] sm:$0xff]  ;;  %598 = vmatpush.msra.mxu0 %v596_v4  ;;  %v561_v6 = vld [vmem:[#allocation3 + $0xd8] sm:$0xff]  ;;  %v594_v7 = vld [vmem:[#allocation5 + $0xe0] sm:$0xff]  ;;  %s2250_s21 = smov (!%p499_p7, %s1486_s21), 1  ;;  %vm1223_vm5 = vcmask 0  }
  0x17   : > { %639 = vmatpush.msra.mxu2 %v562_v1  ;;  %v558_v8 = vld [vmem:[#allocation3 + $0xc0] sm:$0xff]  ;;  %v597_v9 = vld [vmem:[#allocation5 + $0xf8] sm:$0xff]  ;;  %v559_v10 = vld [vmem:[#allocation3 + $0xc8] sm:$0xff]  ;;  %s1349_s26 = sshll.u32 %s2250_s21, 1  ;;  %s522_s27 = scalar_lea.vmem %s2240_s12, %s2250_s21 }
  0x18   : > { %659 = vmatpush.msra.mxu3 %v563_v3  ;;  %599 = vmatpush.msra.mxu0 %v594_v7  ;;  %v592_v11 = vld [vmem:[#allocation5 + $0xd0] sm:$0xff]  ;;  %v595_v12 = vld [vmem:[#allocation5 + $0xe8] sm:$0xff]  ;;  %v590_v13 = vld [vmem:[#allocation5 + $0xc0] sm:$0xff]  ;;  %s505_s29 = scalar_lea.vmem %s2228_s0, %s1349_s26  ;;  %s514_s14 = scalar_lea.vmem %s2229_s1, %s1349_s26 }
  0x19   : > { %618 = vmatpush.msra.mxu1 %v597_v9  ;;  %640 = vmatpush.msra.mxu2 %v560_v5  ;;  %v593_v14 = vld [vmem:[#allocation5 + $0xd8] sm:$0xff]  ;;  %v556_v15 = vld [vmem:[#allocation3 + $0xb0] sm:$0xff]  ;;  %v591_v18 = vld [vmem:[#allocation5 + $0xc8] sm:$0xff] }
  0x1a   : > { %660 = vmatpush.msra.mxu3 %v561_v6  ;;  %600 = vmatpush.msra.mxu0 %v592_v11  ;;  %v557_v16 = vld [vmem:[#allocation3 + $0xb8] sm:$0xff]  ;;  %v588_v17 = vld [vmem:[#allocation5 + $0xb0] sm:$0xff]  ;;  %v554_v19 = vld [vmem:[#allocation3 + $0xa0] sm:$0xff] }
  0x1b   : > { %619 = vmatpush.msra.mxu1 %v595_v12  ;;  %641 = vmatpush.msra.mxu2 %v558_v8  ;;  %v555_v20 = vld [vmem:[#allocation3 + $0xa8] sm:$0xff]  ;;  %v586_v21 = vld [vmem:[#allocation5 + $0xa0] sm:$0xff]  ;;  %v589_v22 = vld [vmem:[#allocation5 + $0xb8] sm:$0xff] }
  0x1c   : > { %661 = vmatpush.msra.mxu3 %v559_v10  ;;  %601 = vmatpush.msra.mxu0 %v590_v13  ;;  %v552_v23 = vld [vmem:[#allocation3 + $0x90] sm:$0xff]  ;;  %v553_v24 = vld [vmem:[#allocation3 + $0x98] sm:$0xff]  ;;  %v587_v26 = vld [vmem:[#allocation5 + $0xa8] sm:$0xff] }
  0x1d   : > { %620 = vmatpush.msra.mxu1 %v593_v14  ;;  %642 = vmatpush.msra.mxu2 %v556_v15  ;;  %v584_v25 = vld [vmem:[#allocation5 + $0x90] sm:$0xff]  ;;  %v550_v27 = vld [vmem:[#allocation3 + $0x80] sm:$0xff]  ;;  %v551_v28 = vld [vmem:[#allocation3 + $0x88] sm:$0xff] }
  0x1e   : > { %662 = vmatpush.msra.mxu3 %v557_v16  ;;  %602 = vmatpush.msra.mxu0 %v588_v17  ;;  %v582_v29 = vld [vmem:[#allocation5 + $0x80] sm:$0xff]  ;;  %v585_v30 = vld [vmem:[#allocation5 + $0x98] sm:$0xff]  ;;  %v548_v31 = vld [vmem:[#allocation3 + $0x70] sm:$0xff] }
  0x1f   : > { %621 = vmatpush.msra.mxu1 %v591_v18  ;;  %643 = vmatpush.msra.mxu2 %v554_v19  ;;  %v549_v32 = vld [vmem:[#allocation3 + $0x78] sm:$0xff]  ;;  %v580_v33 = vld [vmem:[#allocation5 + $0x70] sm:$0xff]  ;;  %v583_v34 = vld [vmem:[#allocation5 + $0x88] sm:$0xff] }
  0x20   : > { %663 = vmatpush.msra.mxu3 %v555_v20  ;;  %603 = vmatpush.msra.mxu0 %v586_v21  ;;  %v546_v35 = vld [vmem:[#allocation3 + $0x60] sm:$0xff]  ;;  %v547_v36 = vld [vmem:[#allocation3 + $0x68] sm:$0xff]  ;;  %v581_v38 = vld [vmem:[#allocation5 + $0x78] sm:$0xff] }
  0x21   : > { %622 = vmatpush.msra.mxu1 %v589_v22  ;;  %644 = vmatpush.msra.mxu2 %v552_v23  ;;  %v578_v37 = vld [vmem:[#allocation5 + $0x60] sm:$0xff]  ;;  %v544_v39 = vld [vmem:[#allocation3 + $0x50] sm:$0xff]  ;;  %v545_v40 = vld [vmem:[#allocation3 + $0x58] sm:$0xff] }
  0x22   : > { %664 = vmatpush.msra.mxu3 %v553_v24  ;;  %604 = vmatpush.msra.mxu0 %v584_v25  ;;  %v576_v41 = vld [vmem:[#allocation5 + $0x50] sm:$0xff]  ;;  %v579_v42 = vld [vmem:[#allocation5 + $0x68] sm:$0xff]  ;;  %v542_v43 = vld [vmem:[#allocation3 + $0x40] sm:$0xff] }
  0x23   : > { %623 = vmatpush.msra.mxu1 %v587_v26  ;;  %645 = vmatpush.msra.mxu2 %v550_v27  ;;  %v543_v44 = vld [vmem:[#allocation3 + $0x48] sm:$0xff]  ;;  %v574_v45 = vld [vmem:[#allocation5 + $0x40] sm:$0xff]  ;;  %v577_v46 = vld [vmem:[#allocation5 + $0x58] sm:$0xff] }
  0x24   : > { %665 = vmatpush.msra.mxu3 %v551_v28  ;;  %605 = vmatpush.msra.mxu0 %v582_v29  ;;  %v540_v47 = vld [vmem:[#allocation3 + $0x30] sm:$0xff]  ;;  %v541_v48 = vld [vmem:[#allocation3 + $0x38] sm:$0xff]  ;;  %v575_v50 = vld [vmem:[#allocation5 + $0x48] sm:$0xff] }
  0x25   : > { %624 = vmatpush.msra.mxu1 %v585_v30  ;;  %646 = vmatpush.msra.mxu2 %v548_v31  ;;  %v572_v49 = vld [vmem:[#allocation5 + $0x30] sm:$0xff]  ;;  %v538_v51 = vld [vmem:[#allocation3 + $0x20] sm:$0xff]  ;;  %v539_v52 = vld [vmem:[#allocation3 + $0x28] sm:$0xff] }
  0x26   : > { %666 = vmatpush.msra.mxu3 %v549_v32  ;;  %606 = vmatpush.msra.mxu0 %v580_v33  ;;  %v570_v53 = vld [vmem:[#allocation5 + $0x20] sm:$0xff]  ;;  %v573_v54 = vld [vmem:[#allocation5 + $0x38] sm:$0xff]  ;;  %v536_v55 = vld [vmem:[#allocation3 + $0x10] sm:$0xff] }
  0x27   : > { %625 = vmatpush.msra.mxu1 %v583_v34  ;;  %647 = vmatpush.msra.mxu2 %v546_v35  ;;  %v537_v56 = vld [vmem:[#allocation3 + $0x18] sm:$0xff]  ;;  %v568_v57 = vld [vmem:[#allocation5 + $0x10] sm:$0xff]  ;;  %v571_v58 = vld [vmem:[#allocation5 + $0x28] sm:$0xff] }
  0x28   : > { %667 = vmatpush.msra.mxu3 %v547_v36  ;;  %607 = vmatpush.msra.mxu0 %v578_v37  ;;  %v534_v59 = vld [vmem:[#allocation3] sm:$0xff]  ;;  %v535_v60 = vld [vmem:[#allocation3 + $0x8] sm:$0xff]  ;;  %v532_v61 = vld [vmem:[%s505_s29] sm:$0x3] }
  0x29   : > { %626 = vmatpush.msra.mxu1 %v581_v38  ;;  %648 = vmatpush.msra.mxu2 %v544_v39  ;;  %v566_v62 = vld [vmem:[#allocation5] sm:$0xff]  ;;  %v569_v63 = vld [vmem:[#allocation5 + $0x18] sm:$0xff]  ;;  %v567_v2 = vld [vmem:[#allocation5 + $0x8] sm:$0xff] }
  0x2a   : > { %668 = vmatpush.msra.mxu3 %v545_v40  ;;  %608 = vmatpush.msra.mxu0 %v576_v41  ;;  %v533_v0 = vld [vmem:[%s514_s14] sm:$0x3]  ;;  %v719_v1 = vld [vmem:[%s2233_s5 + $0xf8] sm:$0xff]  ;;  %v718_v3 = vld [vmem:[%s2233_s5 + $0xf0] sm:$0xff] }
  0x2b   : > { %627 = vmatpush.msra.mxu1 %v579_v42  ;;  %649 = vmatpush.msra.mxu2 %v542_v43  ;;  %v717_v4 = vld [vmem:[%s2233_s5 + $0xe8] sm:$0xff]  ;;  %v716_v5 = vld [vmem:[%s2233_s5 + $0xe0] sm:$0xff]  ;;  %v750_v6 = vld [vmem:[%s2233_s5 + $0x1f0] sm:$0xff] }
  0x2c   : > { %669 = vmatpush.msra.mxu3 %v543_v44  ;;  %609 = vmatpush.msra.mxu0 %v574_v45  ;;  %v751_v7 = vld [vmem:[%s2233_s5 + $0x1f8] sm:$0xff]  ;;  %v714_v9 = vld [vmem:[%s2233_s5 + $0xd0] sm:$0xff]  ;;  %v748_v10 = vld [vmem:[%s2233_s5 + $0x1e0] sm:$0xff] }
  0x2d   : > { %628 = vmatpush.msra.mxu1 %v577_v46  ;;  %650 = vmatpush.msra.mxu2 %v540_v47  ;;  %v715_v8 = vld [vmem:[%s2233_s5 + $0xd8] sm:$0xff]  ;;  %v749_v11 = vld [vmem:[%s2233_s5 + $0x1e8] sm:$0xff]  ;;  %v712_v13 = vld [vmem:[%s2233_s5 + $0xc0] sm:$0xff] }
  0x2e   : > { %670 = vmatpush.msra.mxu3 %v541_v48  ;;  %610 = vmatpush.msra.mxu0 %v572_v49  ;;  %v713_v12 = vld [vmem:[%s2233_s5 + $0xc8] sm:$0xff]  ;;  %v746_v14 = vld [vmem:[%s2233_s5 + $0x1d0] sm:$0xff]  ;;  %v747_v15 = vld [vmem:[%s2233_s5 + $0x1d8] sm:$0xff] }
  0x2f   : > { %629 = vmatpush.msra.mxu1 %v575_v50  ;;  %651 = vmatpush.msra.mxu2 %v538_v51  ;;  %v711_v16 = vld [vmem:[%s2233_s5 + $0xb8] sm:$0xff]  ;;  %v710_v17 = vld [vmem:[%s2233_s5 + $0xb0] sm:$0xff]  ;;  %v744_v18 = vld [vmem:[%s2233_s5 + $0x1c0] sm:$0xff] }
  0x30   : > { %671 = vmatpush.msra.mxu3 %v539_v52  ;;  %611 = vmatpush.msra.mxu0 %v570_v53  ;;  %v745_v19 = vld [vmem:[%s2233_s5 + $0x1c8] sm:$0xff]  ;;  %v708_v21 = vld [vmem:[%s2233_s5 + $0xa0] sm:$0xff]  ;;  %v742_v22 = vld [vmem:[%s2233_s5 + $0x1b0] sm:$0xff] }
  0x31   : > { %630 = vmatpush.msra.mxu1 %v573_v54  ;;  %652 = vmatpush.msra.mxu2 %v536_v55  ;;  %v709_v20 = vld [vmem:[%s2233_s5 + $0xa8] sm:$0xff]  ;;  %v743_v23 = vld [vmem:[%s2233_s5 + $0x1b8] sm:$0xff]  ;;  %v706_v25 = vld [vmem:[%s2233_s5 + $0x90] sm:$0xff] }
  0x32   : > { %672 = vmatpush.msra.mxu3 %v537_v56  ;;  %612 = vmatpush.msra.mxu0 %v568_v57  ;;  %v707_v24 = vld [vmem:[%s2233_s5 + $0x98] sm:$0xff]  ;;  %v740_v26 = vld [vmem:[%s2233_s5 + $0x1a0] sm:$0xff]  ;;  %v741_v27 = vld [vmem:[%s2233_s5 + $0x1a8] sm:$0xff] }
  0x33   : > { %631 = vmatpush.msra.mxu1 %v571_v58  ;;  %653 = vmatpush.msra.mxu2 %v534_v59  ;;  %v705_v28 = vld [vmem:[%s2233_s5 + $0x88] sm:$0xff]  ;;  %v704_v29 = vld [vmem:[%s2233_s5 + $0x80] sm:$0xff]  ;;  %v738_v30 = vld [vmem:[%s2233_s5 + $0x190] sm:$0xff] }
  0x34   : > { %673 = vmatpush.msra.mxu3 %v535_v60  ;;  %654 = vmatmul.f32.vlgmr.msra.gmra.mxu2 %v532_v61  ;;  %v739_v31 = vld [vmem:[%s2233_s5 + $0x198] sm:$0xff]  ;;  %v702_v33 = vld [vmem:[%s2233_s5 + $0x70] sm:$0xff]  ;;  %v736_v34 = vld [vmem:[%s2233_s5 + $0x180] sm:$0xff] }
  0x35   : > { %674 = vmatmul.f32.vlgmr.msra.gmra.mxu3 %v532_v61  ;;  %613 = vmatpush.msra.mxu0 %v566_v62  ;;  %v703_v32 = vld [vmem:[%s2233_s5 + $0x78] sm:$0xff]  ;;  %v737_v35 = vld [vmem:[%s2233_s5 + $0x188] sm:$0xff]  ;;  %v700_v37 = vld [vmem:[%s2233_s5 + $0x60] sm:$0xff] }
  0x36   : > { %632 = vmatpush.msra.mxu1 %v569_v63  ;;  %614 = vmatmul.f32.vlgmr.msra.gmra.mxu0 %v533_v0  ;;  %v701_v36 = vld [vmem:[%s2233_s5 + $0x68] sm:$0xff]  ;;  %v734_v38 = vld [vmem:[%s2233_s5 + $0x170] sm:$0xff]  ;;  %v735_v39 = vld [vmem:[%s2233_s5 + $0x178] sm:$0xff] }
  0x37   : > { %798 = vmatpush.msrb.mxu2 %v719_v1  ;;  %758 = vmatpush.msrb.mxu0 %v718_v3  ;;  %v699_v40 = vld [vmem:[%s2233_s5 + $0x58] sm:$0xff]  ;;  %v698_v41 = vld [vmem:[%s2233_s5 + $0x50] sm:$0xff]  ;;  %v732_v42 = vld [vmem:[%s2233_s5 + $0x160] sm:$0xff] }
  0x38   : > { %633 = vmatpush.msra.mxu1 %v567_v2  ;;  %818 = vmatpush.msrb.mxu3 %v751_v7  ;;  %v733_v43 = vld [vmem:[%s2233_s5 + $0x168] sm:$0xff]  ;;  %v696_v45 = vld [vmem:[%s2233_s5 + $0x40] sm:$0xff]  ;;  %v730_v46 = vld [vmem:[%s2233_s5 + $0x150] sm:$0xff] }
  0x39   : > { %634 = vmatmul.f32.vlgmr.msra.gmra.mxu1 %v533_v0  ;;  %799 = vmatpush.msrb.mxu2 %v717_v4  ;;  %v697_v44 = vld [vmem:[%s2233_s5 + $0x48] sm:$0xff]  ;;  %v731_v47 = vld [vmem:[%s2233_s5 + $0x158] sm:$0xff]  ;;  %v694_v48 = vld [vmem:[%s2233_s5 + $0x30] sm:$0xff] }
  0x3a   : > { %759 = vmatpush.msrb.mxu0 %v716_v5  ;;  %778 = vmatpush.msrb.mxu1 %v750_v6  ;;  %v728_v49 = vld [vmem:[%s2233_s5 + $0x140] sm:$0xff]  ;;  %v695_v50 = vld [vmem:[%s2233_s5 + $0x38] sm:$0xff]  ;;  %v729_v51 = vld [vmem:[%s2233_s5 + $0x148] sm:$0xff] }
  0x3b   : > { %800 = vmatpush.msrb.mxu2 %v715_v8  ;;  %819 = vmatpush.msrb.mxu3 %v749_v11  ;;  %v692_v52 = vld [vmem:[%s2233_s5 + $0x20] sm:$0xff]  ;;  %v726_v53 = vld [vmem:[%s2233_s5 + $0x130] sm:$0xff]  ;;  %v693_v54 = vld [vmem:[%s2233_s5 + $0x28] sm:$0xff] }
  0x3c   : > { %760 = vmatpush.msrb.mxu0 %v714_v9  ;;  %779 = vmatpush.msrb.mxu1 %v748_v10  ;;  %v727_v55 = vld [vmem:[%s2233_s5 + $0x138] sm:$0xff]  ;;  %v690_v56 = vld [vmem:[%s2233_s5 + $0x10] sm:$0xff]  ;;  %v724_v57 = vld [vmem:[%s2233_s5 + $0x120] sm:$0xff] }
  0x3d   : > { %801 = vmatpush.msrb.mxu2 %v713_v12  ;;  %820 = vmatpush.msrb.mxu3 %v747_v15  ;;  %v691_v58 = vld [vmem:[%s2233_s5 + $0x18] sm:$0xff]  ;;  %v725_v59 = vld [vmem:[%s2233_s5 + $0x128] sm:$0xff]  ;;  %v688_v60 = vld [vmem:[%s2233_s5] sm:$0xff] }
  0x3e   : > { %761 = vmatpush.msrb.mxu0 %v712_v13  ;;  %780 = vmatpush.msrb.mxu1 %v746_v14  ;;  %v722_v61 = vld [vmem:[%s2233_s5 + $0x110] sm:$0xff]  ;;  %v689_v62 = vld [vmem:[%s2233_s5 + $0x8] sm:$0xff]  ;;  %v723_v63 = vld [vmem:[%s2233_s5 + $0x118] sm:$0xff] }
  0x3f   : > { %802 = vmatpush.msrb.mxu2 %v711_v16  ;;  %821 = vmatpush.msrb.mxu3 %v745_v19  ;;  %v720_v0 = vld [vmem:[%s2233_s5 + $0x100] sm:$0xff]  ;;  %v721_v1 = vld [vmem:[%s2233_s5 + $0x108] sm:$0xff]  ;;  %v870_v2 = vld [vmem:[%s2235_s7 + $0xf0] sm:$0xff] }
  0x40   : > { %762 = vmatpush.msrb.mxu0 %v710_v17  ;;  %781 = vmatpush.msrb.mxu1 %v744_v18  ;;  %v871_v3 = vld [vmem:[%s2235_s7 + $0xf8] sm:$0xff]  ;;  %v868_v4 = vld [vmem:[%s2235_s7 + $0xe0] sm:$0xff]  ;;  %v869_v5 = vld [vmem:[%s2235_s7 + $0xe8] sm:$0xff] }
  0x41   : > { %803 = vmatpush.msrb.mxu2 %v709_v20  ;;  %822 = vmatpush.msrb.mxu3 %v743_v23  ;;  %v866_v6 = vld [vmem:[%s2235_s7 + $0xd0] sm:$0xff]  ;;  %v867_v8 = vld [vmem:[%s2235_s7 + $0xd8] sm:$0xff]  ;;  %v900_v10 = vld [vmem:[%s2235_s7 + $0x1e0] sm:$0xff] }
  0x42   : > { %763 = vmatpush.msrb.mxu0 %v708_v21  ;;  %782 = vmatpush.msrb.mxu1 %v742_v22  ;;  %v902_v7 = vld [vmem:[%s2235_s7 + $0x1f0] sm:$0xff]  ;;  %v903_v9 = vld [vmem:[%s2235_s7 + $0x1f8] sm:$0xff]  ;;  %v864_v11 = vld [vmem:[%s2235_s7 + $0xc0] sm:$0xff] }
  0x43   : > { %804 = vmatpush.msrb.mxu2 %v707_v24  ;;  %823 = vmatpush.msrb.mxu3 %v741_v27  ;;  %v901_v12 = vld [vmem:[%s2235_s7 + $0x1e8] sm:$0xff]  ;;  %v898_v14 = vld [vmem:[%s2235_s7 + $0x1d0] sm:$0xff]  ;;  %v899_v15 = vld [vmem:[%s2235_s7 + $0x1d8] sm:$0xff] }
  0x44   : > { %764 = vmatpush.msrb.mxu0 %v706_v25  ;;  %783 = vmatpush.msrb.mxu1 %v740_v26  ;;  %v865_v13 = vld [vmem:[%s2235_s7 + $0xc8] sm:$0xff]  ;;  %v862_v16 = vld [vmem:[%s2235_s7 + $0xb0] sm:$0xff]  ;;  %v896_v17 = vld [vmem:[%s2235_s7 + $0x1c0] sm:$0xff] }
  0x45   : > { %805 = vmatpush.msrb.mxu2 %v705_v28  ;;  %824 = vmatpush.msrb.mxu3 %v739_v31  ;;  %v863_v18 = vld [vmem:[%s2235_s7 + $0xb8] sm:$0xff]  ;;  %v897_v19 = vld [vmem:[%s2235_s7 + $0x1c8] sm:$0xff]  ;;  %v860_v20 = vld [vmem:[%s2235_s7 + $0xa0] sm:$0xff] }
  0x46   : > { %765 = vmatpush.msrb.mxu0 %v704_v29  ;;  %784 = vmatpush.msrb.mxu1 %v738_v30  ;;  %v894_v21 = vld [vmem:[%s2235_s7 + $0x1b0] sm:$0xff]  ;;  %v861_v22 = vld [vmem:[%s2235_s7 + $0xa8] sm:$0xff]  ;;  %v895_v23 = vld [vmem:[%s2235_s7 + $0x1b8] sm:$0xff] }
  0x47   : > { %806 = vmatpush.msrb.mxu2 %v703_v32  ;;  %825 = vmatpush.msrb.mxu3 %v737_v35  ;;  %v858_v24 = vld [vmem:[%s2235_s7 + $0x90] sm:$0xff]  ;;  %v892_v25 = vld [vmem:[%s2235_s7 + $0x1a0] sm:$0xff]  ;;  %v859_v26 = vld [vmem:[%s2235_s7 + $0x98] sm:$0xff] }
  0x48   : > { %766 = vmatpush.msrb.mxu0 %v702_v33  ;;  %785 = vmatpush.msrb.mxu1 %v736_v34  ;;  %v893_v27 = vld [vmem:[%s2235_s7 + $0x1a8] sm:$0xff]  ;;  %v856_v28 = vld [vmem:[%s2235_s7 + $0x80] sm:$0xff]  ;;  %v890_v29 = vld [vmem:[%s2235_s7 + $0x190] sm:$0xff] }
  0x49   : > { %807 = vmatpush.msrb.mxu2 %v701_v36  ;;  %826 = vmatpush.msrb.mxu3 %v735_v39  ;;  %v857_v30 = vld [vmem:[%s2235_s7 + $0x88] sm:$0xff]  ;;  %v891_v31 = vld [vmem:[%s2235_s7 + $0x198] sm:$0xff]  ;;  %v854_v32 = vld [vmem:[%s2235_s7 + $0x70] sm:$0xff] }
  0x4a   : > { %767 = vmatpush.msrb.mxu0 %v700_v37  ;;  %786 = vmatpush.msrb.mxu1 %v734_v38  ;;  %v888_v33 = vld [vmem:[%s2235_s7 + $0x180] sm:$0xff]  ;;  %v855_v34 = vld [vmem:[%s2235_s7 + $0x78] sm:$0xff]  ;;  %v889_v35 = vld [vmem:[%s2235_s7 + $0x188] sm:$0xff] }
  0x4b   : > { %808 = vmatpush.msrb.mxu2 %v699_v40  ;;  %827 = vmatpush.msrb.mxu3 %v733_v43  ;;  %v852_v36 = vld [vmem:[%s2235_s7 + $0x60] sm:$0xff]  ;;  %v886_v37 = vld [vmem:[%s2235_s7 + $0x170] sm:$0xff]  ;;  %v853_v38 = vld [vmem:[%s2235_s7 + $0x68] sm:$0xff] }
  0x4c   : > { %768 = vmatpush.msrb.mxu0 %v698_v41  ;;  %787 = vmatpush.msrb.mxu1 %v732_v42  ;;  %v887_v39 = vld [vmem:[%s2235_s7 + $0x178] sm:$0xff]  ;;  %v850_v40 = vld [vmem:[%s2235_s7 + $0x50] sm:$0xff]  ;;  %v678_v42 = vld [vmem:[%s2232_s4] sm:$0x3] }
  0x4d   : > { %809 = vmatpush.msrb.mxu2 %v697_v44  ;;  %828 = vmatpush.msrb.mxu3 %v731_v47  ;;  %v851_v41 = vld [vmem:[%s2235_s7 + $0x58] sm:$0xff]  ;;  %v848_v43 = vld [vmem:[%s2235_s7 + $0x40] sm:$0xff]  ;;  %v849_v44 = vld [vmem:[%s2235_s7 + $0x48] sm:$0xff]  ;;  %v680_v47 = vperm.slane %v678_v42, 0 }
  0x4e   : > { %769 = vmatpush.msrb.mxu0 %v696_v45  ;;  %788 = vmatpush.msrb.mxu1 %v730_v46 }
  0x4f   : > { %810 = vmatpush.msrb.mxu2 %v695_v50  ;;  %829 = vmatpush.msrb.mxu3 %v729_v51 }
  0x50   : > { %770 = vmatpush.msrb.mxu0 %v694_v48  ;;  %789 = vmatpush.msrb.mxu1 %v728_v49  ;;  %v681_v48 = vperm.slane %v678_v42, 1 }
  0x51   : > { %811 = vmatpush.msrb.mxu2 %v693_v54  ;;  %830 = vmatpush.msrb.mxu3 %v727_v55 }
  0x52   : > { %771 = vmatpush.msrb.mxu0 %v692_v52  ;;  %790 = vmatpush.msrb.mxu1 %v726_v53 }
  0x53   : > { %812 = vmatpush.msrb.mxu2 %v691_v58  ;;  %831 = vmatpush.msrb.mxu3 %v725_v59  ;;  %v884_v58 = vld [vmem:[%s2235_s7 + $0x160] sm:$0xff]  ;;  %v847_v59 = vld [vmem:[%s2235_s7 + $0x38] sm:$0xff] }
  0x54   : > { %772 = vmatpush.msrb.mxu0 %v690_v56  ;;  %791 = vmatpush.msrb.mxu1 %v724_v57  ;;  %v846_v57 = vld [vmem:[%s2235_s7 + $0x30] sm:$0xff] }
  0x55   : > { %813 = vmatpush.msrb.mxu2 %v689_v62  ;;  %832 = vmatpush.msrb.mxu3 %v723_v63  ;;  %v882_v62 = vld [vmem:[%s2235_s7 + $0x150] sm:$0xff]  ;;  %v845_v63 = vld [vmem:[%s2235_s7 + $0x28] sm:$0xff] }
  0x56   : > { %773 = vmatpush.msrb.mxu0 %v688_v60  ;;  %792 = vmatpush.msrb.mxu1 %v722_v61  ;;  %v885_v60 = vld [vmem:[%s2235_s7 + $0x168] sm:$0xff]  ;;  %v844_v61 = vld [vmem:[%s2235_s7 + $0x20] sm:$0xff] }
  0x57   : > { %833 = vmatpush.msrb.mxu3 %v721_v1  ;;  %950 = vmatpush.msra.mxu2 %v871_v3  ;;  %v842_v1 = vld [vmem:[%s2235_s7 + $0x10] sm:$0xff]  ;;  %v843_v3 = vld [vmem:[%s2235_s7 + $0x18] sm:$0xff] }
  0x58   : > { %793 = vmatpush.msrb.mxu1 %v720_v0  ;;  %910 = vmatpush.msra.mxu0 %v870_v2  ;;  %v883_v0 = vld [vmem:[%s2235_s7 + $0x158] sm:$0xff]  ;;  %v880_v2 = vld [vmem:[%s2235_s7 + $0x140] sm:$0xff] }
  0x59   : > { %951 = vmatpush.msra.mxu2 %v869_v5  ;;  %970 = vmatpush.msra.mxu3 %v903_v9  ;;  %v840_v5 = vld [vmem:[%s2235_s7] sm:$0xff] }
  0x5a   : > { %911 = vmatpush.msra.mxu0 %v868_v4  ;;  %930 = vmatpush.msra.mxu1 %v902_v7  ;;  %v881_v4 = vld [vmem:[%s2235_s7 + $0x148] sm:$0xff]  ;;  %v876_v9 = vld [vmem:[%s2235_s7 + $0x120] sm:$0xff] }
  0x5b   : > { %952 = vmatpush.msra.mxu2 %v867_v8  ;;  %971 = vmatpush.msra.mxu3 %v901_v12  ;;  %v841_v7 = vld [vmem:[%s2235_s7 + $0x8] sm:$0xff]  ;;  %v879_v8 = vld [vmem:[%s2235_s7 + $0x138] sm:$0xff] }
  0x5c   : > { %912 = vmatpush.msra.mxu0 %v866_v6  ;;  %931 = vmatpush.msra.mxu1 %v900_v10  ;;  %v878_v6 = vld [vmem:[%s2235_s7 + $0x130] sm:$0xff]  ;;  %v877_v10 = vld [vmem:[%s2235_s7 + $0x128] sm:$0xff]  ;;  %v875_v12 = vld [vmem:[%s2235_s7 + $0x118] sm:$0xff] }
  0x5d   : > { %953 = vmatpush.msra.mxu2 %v865_v13  ;;  %972 = vmatpush.msra.mxu3 %v899_v15  ;;  %v872_v13 = vld [vmem:[%s2235_s7 + $0x100] sm:$0xff]  ;;  %v1022_v15 = vld [vmem:[%s2237_s9 + $0xf0] sm:$0xff] }
  0x5e   : > { %913 = vmatpush.msra.mxu0 %v864_v11  ;;  %932 = vmatpush.msra.mxu1 %v898_v14  ;;  %v874_v11 = vld [vmem:[%s2235_s7 + $0x110] sm:$0xff]  ;;  %v873_v14 = vld [vmem:[%s2235_s7 + $0x108] sm:$0xff] }
  0x5f   : > { %954 = vmatpush.msra.mxu2 %v863_v18  ;;  %973 = vmatpush.msra.mxu3 %v897_v19  ;;  %v1021_v18 = vld [vmem:[%s2237_s9 + $0xe8] sm:$0xff]  ;;  %v1018_v19 = vld [vmem:[%s2237_s9 + $0xd0] sm:$0xff] }
  0x60   : > { %914 = vmatpush.msra.mxu0 %v862_v16  ;;  %933 = vmatpush.msra.mxu1 %v896_v17  ;;  %v1023_v16 = vld [vmem:[%s2237_s9 + $0xf8] sm:$0xff]  ;;  %v1020_v17 = vld [vmem:[%s2237_s9 + $0xe0] sm:$0xff] }
  0x61   : > { %955 = vmatpush.msra.mxu2 %v861_v22  ;;  %974 = vmatpush.msra.mxu3 %v895_v23  ;;  %v1017_v22 = vld [vmem:[%s2237_s9 + $0xc8] sm:$0xff]  ;;  %v1014_v23 = vld [vmem:[%s2237_s9 + $0xb0] sm:$0xff] }
  0x62   : > { %915 = vmatpush.msra.mxu0 %v860_v20  ;;  %934 = vmatpush.msra.mxu1 %v894_v21  ;;  %v1019_v20 = vld [vmem:[%s2237_s9 + $0xd8] sm:$0xff]  ;;  %v1016_v21 = vld [vmem:[%s2237_s9 + $0xc0] sm:$0xff] }
  0x63   : > { %956 = vmatpush.msra.mxu2 %v859_v26  ;;  %975 = vmatpush.msra.mxu3 %v893_v27  ;;  %v1013_v26 = vld [vmem:[%s2237_s9 + $0xa8] sm:$0xff]  ;;  %v1010_v27 = vld [vmem:[%s2237_s9 + $0x90] sm:$0xff] }
  0x64   : > { %916 = vmatpush.msra.mxu0 %v858_v24  ;;  %935 = vmatpush.msra.mxu1 %v892_v25  ;;  %v1015_v24 = vld [vmem:[%s2237_s9 + $0xb8] sm:$0xff]  ;;  %v1012_v25 = vld [vmem:[%s2237_s9 + $0xa0] sm:$0xff] }
  0x65   : > { %957 = vmatpush.msra.mxu2 %v857_v30  ;;  %976 = vmatpush.msra.mxu3 %v891_v31  ;;  %v1009_v30 = vld [vmem:[%s2237_s9 + $0x88] sm:$0xff]  ;;  %v752_v31 = vld [vmem:[%s2234_s6] sm:$0x3] }
  0x66   : > { %917 = vmatpush.msra.mxu0 %v856_v28  ;;  %936 = vmatpush.msra.mxu1 %v890_v29  ;;  %v1011_v28 = vld [vmem:[%s2237_s9 + $0x98] sm:$0xff]  ;;  %v1008_v29 = vld [vmem:[%s2237_s9 + $0x80] sm:$0xff] }
  0x67   : > { %958 = vmatpush.msra.mxu2 %v855_v34  ;;  %977 = vmatpush.msra.mxu3 %v889_v35  ;;  %v754_v34 = vperm.slane %v752_v31, 0  ;;  %v1004_v35 = vld [vmem:[%s2237_s9 + $0x60] sm:$0xff] }
  0x68   : > { %918 = vmatpush.msra.mxu0 %v854_v32  ;;  %937 = vmatpush.msra.mxu1 %v888_v33  ;;  %v1006_v32 = vld [vmem:[%s2237_s9 + $0x70] sm:$0xff]  ;;  %v1007_v33 = vld [vmem:[%s2237_s9 + $0x78] sm:$0xff] }
  0x69   : > { %959 = vmatpush.msra.mxu2 %v853_v38  ;;  %978 = vmatpush.msra.mxu3 %v887_v39 }
  0x6a   : > { %919 = vmatpush.msra.mxu0 %v852_v36  ;;  %938 = vmatpush.msra.mxu1 %v886_v37  ;;  %v1005_v36 = vld [vmem:[%s2237_s9 + $0x68] sm:$0xff] }
  0x6b   : > { %960 = vmatpush.msra.mxu2 %v851_v41  ;;  %979 = vmatpush.msra.mxu3 %v885_v60  ;;  %v755_v41 = vperm.slane %v752_v31, 1  ;;  %v993_v60 = vld [vmem:[%s2237_s9 + $0x8] sm:$0xff]  ;;  %v1163_v31 = vld [vmem:[%s2239_s11 + $0x30] sm:$0xff] }
  0x6c   : > { %920 = vmatpush.msra.mxu0 %v850_v40  ;;  %939 = vmatpush.msra.mxu1 %v884_v58  ;;  %v1030_v58 = vld [vmem:[%s2237_s9 + $0x130] sm:$0xff] }
  0x6d   : > { %961 = vmatpush.msra.mxu2 %v849_v44  ;;  %980 = vmatpush.msra.mxu3 %v883_v0  ;;  %v1031_v0 = vld [vmem:[%s2237_s9 + $0x138] sm:$0xff] }
  0x6e   : > { %921 = vmatpush.msra.mxu0 %v848_v43  ;;  %940 = vmatpush.msra.mxu1 %v882_v62  ;;  %v1026_v62 = vld [vmem:[%s2237_s9 + $0x110] sm:$0xff] }
  0x6f   : > { %962 = vmatpush.msra.mxu2 %v847_v59  ;;  %981 = vmatpush.msra.mxu3 %v881_v4  ;;  %v992_v59 = vld [vmem:[%s2237_s9] sm:$0xff] }
  0x70   : > { %922 = vmatpush.msra.mxu0 %v846_v57  ;;  %941 = vmatpush.msra.mxu1 %v880_v2  ;;  %v995_v57 = vld [vmem:[%s2237_s9 + $0x18] sm:$0xff]  ;;  %v904_v4 = vld [vmem:[%s2236_s8] sm:$0x3] }
  0x71   : > { %963 = vmatpush.msra.mxu2 %v845_v63  ;;  %982 = vmatpush.msra.mxu3 %v879_v8  ;;  %v1024_v63 = vld [vmem:[%s2237_s9 + $0x100] sm:$0xff]  ;;  %v1027_v2 = vld [vmem:[%s2237_s9 + $0x118] sm:$0xff] }
  0x72   : > { %923 = vmatpush.msra.mxu0 %v844_v61  ;;  %942 = vmatpush.msra.mxu1 %v878_v6  ;;  %v1028_v61 = vld [vmem:[%s2237_s9 + $0x120] sm:$0xff] }
  0x73   : > { %964 = vmatpush.msra.mxu2 %v843_v3  ;;  %983 = vmatpush.msra.mxu3 %v877_v10  ;;  %v1025_v3 = vld [vmem:[%s2237_s9 + $0x108] sm:$0xff]  ;;  %v907_v10 = vperm.slane %v904_v4, 1 }
  0x74   : > { %924 = vmatpush.msra.mxu0 %v842_v1  ;;  %943 = vmatpush.msra.mxu1 %v876_v9  ;;  %v1029_v1 = vld [vmem:[%s2237_s9 + $0x128] sm:$0xff] }
  0x75   : > { %965 = vmatpush.msra.mxu2 %v841_v7  ;;  %984 = vmatpush.msra.mxu3 %v875_v12 }
  0x76   : > { %925 = vmatpush.msra.mxu0 %v840_v5  ;;  %944 = vmatpush.msra.mxu1 %v874_v11  ;;  %v906_v5 = vperm.slane %v904_v4, 0 }
  0x77   : > { %985 = vmatpush.msra.mxu3 %v873_v14 }
  0x78   : > { %945 = vmatpush.msra.mxu1 %v872_v13 }
  0xb3   : > { %v615_v45 = vpop.f32.mrf.mxu0 }
  0xb6   : > { %v635_v46 = vpop.f32.mrf.mxu1 }
  0xb7   : > { %v655_v49 = vpop.f32.mrf.mxu2 }
  0xb8   : > { %v675_v50 = vpop.f32.mrf.mxu3  ;;  %v656_v51 = vadd.f32 %v655_v49, %v615_v45  ;;  %v1003_v49 = vld [vmem:[%s2237_s9 + $0x58] sm:$0xff] }
  0xb9   : > { %v676_v52 = vadd.f32 %v675_v50, %v635_v46  ;;  %v1000_v50 = vld [vmem:[%s2237_s9 + $0x40] sm:$0xff] }
  0xba   : > { %v684_v53 = vadd.f32 %v680_v47, %v656_v51  ;;  %v1001_v51 = vld [vmem:[%s2237_s9 + $0x48] sm:$0xff] }
  0xbb   : > { %v685_v54 = vadd.f32 %v681_v48, %v676_v52  ;;  %v1002_v48 = vld [vmem:[%s2237_s9 + $0x50] sm:$0xff] }
  0xbc   : > { %v686_v55 = vmax.f32 %v684_v53, 0.0  ;;  %v998_v52 = vld [vmem:[%s2237_s9 + $0x30] sm:$0xff]  ;;  %v999_v53 = vld [vmem:[%s2237_s9 + $0x38] sm:$0xff] }
  0xbd   : > { %v687_v56 = vmax.f32 %v685_v54, 0.0  ;;  %v996_v54 = vld [vmem:[%s2237_s9 + $0x20] sm:$0xff] }
  0xbe   : > { %774 = vmatmul.f32.vlgmr.msrb.gmra.mxu0 %v686_v55  ;;  %814 = vmatmul.f32.vlgmr.msrb.gmra.mxu2 %v686_v55  ;;  %v997_v55 = vld [vmem:[%s2237_s9 + $0x28] sm:$0xff] }
  0xbf   : > { %794 = vmatmul.f32.vlgmr.msrb.gmra.mxu1 %v687_v56  ;;  %834 = vmatmul.f32.vlgmr.msrb.gmra.mxu3 %v687_v56  ;;  %v994_v56 = vld [vmem:[%s2237_s9 + $0x10] sm:$0xff] }
  0xc0   : > { %1042 = vmatpush.msrb.mxu0 %v1022_v15  ;;  %1082 = vmatpush.msrb.mxu2 %v1023_v16 }
  0xc1   : > { %1074 = vmatpush.msrb.mxu3 %v1030_v58 }
  0xc2   : > { %1043 = vmatpush.msrb.mxu0 %v1020_v17  ;;  %1083 = vmatpush.msrb.mxu2 %v1021_v18  ;;  %v1172_v17 = vld [vmem:[%s2239_s11 + $0x78] sm:$0xff]  ;;  %v1171_v18 = vld [vmem:[%s2239_s11 + $0x70] sm:$0xff] }
  0xc3   : > { %1075 = vmatpush.msrb.mxu3 %v1028_v61  ;;  %1183 = vmatpush.msrb.mxu1 %v1172_v17 }
  0xc4   : > { %1044 = vmatpush.msrb.mxu0 %v1018_v19  ;;  %1084 = vmatpush.msrb.mxu2 %v1019_v20  ;;  %v1170_v19 = vld [vmem:[%s2239_s11 + $0x68] sm:$0xff]  ;;  %v1169_v20 = vld [vmem:[%s2239_s11 + $0x60] sm:$0xff] }
  0xc5   : > { %1076 = vmatpush.msrb.mxu3 %v1026_v62  ;;  %1184 = vmatpush.msrb.mxu1 %v1171_v18 }
  0xc6   : > { %1045 = vmatpush.msrb.mxu0 %v1016_v21  ;;  %1085 = vmatpush.msrb.mxu2 %v1017_v22  ;;  %v527_v21 = vlaneseq  ;;  %v1168_v22 = vld [vmem:[%s2239_s11 + $0x58] sm:$0xff] }
  0xc7   : > { %1077 = vmatpush.msrb.mxu3 %v1024_v63  ;;  %1185 = vmatpush.msrb.mxu1 %v1170_v19 }
  0xc8   : > { %1046 = vmatpush.msrb.mxu0 %v1014_v23  ;;  %1086 = vmatpush.msrb.mxu2 %v1015_v24  ;;  %vm2158_vm1 = vcmp.lt.s32.totalorder %v527_v21, 160  ;;  %v1500_v24 = vmov 0.0  }
  0xc9   : > { %1186 = vmatpush.msrb.mxu1 %v1169_v20  ;;  %531 = vst.msk [vmem:[#allocation2] sm:$0x3] %vm2158_vm1, %v1500_v24 }
  0xca   : > { %1047 = vmatpush.msrb.mxu0 %v1012_v25  ;;  %1087 = vmatpush.msrb.mxu2 %v1013_v26  ;;  %v1167_v25 = vld [vmem:[%s2239_s11 + $0x50] sm:$0xff]  ;;  %v1166_v26 = vld [vmem:[%s2239_s11 + $0x48] sm:$0xff] }
  0xcb   : > { %1187 = vmatpush.msrb.mxu1 %v1168_v22 }
  0xcc   : > { %1048 = vmatpush.msrb.mxu0 %v1010_v27  ;;  %1088 = vmatpush.msrb.mxu2 %v1011_v28  ;;  %v1165_v27 = vld [vmem:[%s2239_s11 + $0x40] sm:$0xff] }
  0xcd   : > { %1188 = vmatpush.msrb.mxu1 %v1167_v25  ;;  %v1032_v28 = vld [vmem:[%s2238_s10] sm:$0x3] }
  0xce   : > { %1049 = vmatpush.msrb.mxu0 %v1008_v29  ;;  %1089 = vmatpush.msrb.mxu2 %v1009_v30  ;;  %v1164_v29 = vld [vmem:[%s2239_s11 + $0x38] sm:$0xff]  ;;  %v1034_v30 = vperm.slane %v1032_v28, 0 }
  0xcf   : > { %1189 = vmatpush.msrb.mxu1 %v1166_v26 }
  0xd0   : > { %1050 = vmatpush.msrb.mxu0 %v1006_v32  ;;  %1090 = vmatpush.msrb.mxu2 %v1007_v33  ;;  %v1162_v33 = vld [vmem:[%s2239_s11 + $0x28] sm:$0xff] }
  0xd1   : > { %1190 = vmatpush.msrb.mxu1 %v1165_v27 }
  0xd2   : > { %1051 = vmatpush.msrb.mxu0 %v1004_v35  ;;  %1091 = vmatpush.msrb.mxu2 %v1005_v36  ;;  %v1161_v35 = vld [vmem:[%s2239_s11 + $0x20] sm:$0xff]  ;;  %v1176_v36 = vld [vmem:[%s2239_s11 + $0x98] sm:$0xff] }
  0xd3   : > { %1191 = vmatpush.msrb.mxu1 %v1164_v29 }
  0xd4   : > { %1052 = vmatpush.msrb.mxu0 %v1002_v48  ;;  %1092 = vmatpush.msrb.mxu2 %v1003_v49  ;;  %v1157_v49 = vld [vmem:[%s2239_s11] sm:$0xff] }
  0xd5   : > { %1192 = vmatpush.msrb.mxu1 %v1163_v31 }
  0xd6   : > { %1053 = vmatpush.msrb.mxu0 %v1000_v50  ;;  %1093 = vmatpush.msrb.mxu2 %v1001_v51 }
  0xd7   : > { %1193 = vmatpush.msrb.mxu1 %v1162_v33 }
  0xd8   : > { %1054 = vmatpush.msrb.mxu0 %v998_v52  ;;  %1094 = vmatpush.msrb.mxu2 %v999_v53 }
  0xd9   : > { %1194 = vmatpush.msrb.mxu1 %v1161_v35 }
  0xda   : > { %1055 = vmatpush.msrb.mxu0 %v996_v54  ;;  %1095 = vmatpush.msrb.mxu2 %v997_v55 }
  0xdc   : > { %1056 = vmatpush.msrb.mxu0 %v994_v56  ;;  %1096 = vmatpush.msrb.mxu2 %v995_v57 }
  0xde   : > { %1057 = vmatpush.msrb.mxu0 %v992_v59  ;;  %1097 = vmatpush.msrb.mxu2 %v993_v60 }
 0x13b   : > { %v775_v37 = vpop.f32.mrf.mxu0 }
 0x13c   : > { %v776_v38 = vadd.f32 %v775_v37, %v754_v34  ;;  %v795_v39 = vpop.f32.mrf.mxu1  ;;  %v1160_v37 = vld [vmem:[%s2239_s11 + $0x18] sm:$0xff] }
 0x13d   : > { %1195 = vmatpush.msrb.mxu1 %v1160_v37 }
 0x13e   : > { %v796_v40 = vadd.f32 %v795_v39, %v776_v38  ;;  %v1175_v39 = vld [vmem:[%s2239_s11 + $0x90] sm:$0xff] }
 0x140   : > { %v838_v42 = vmax.f32 %v796_v40, 0.0 }
 0x141   : > { %v815_v43 = vpop.f32.mrf.mxu2 }
 0x142   : > { %v816_v44 = vadd.f32 %v815_v43, %v755_v41  ;;  %926 = vmatmul.f32.vlgmr.msra.gmra.mxu0 %v838_v42  ;;  %966 = vmatmul.f32.vlgmr.msra.gmra.mxu2 %v838_v42  ;;  %v835_v45 = vpop.f32.mrf.mxu3  ;;  %v1159_v41 = vld [vmem:[%s2239_s11 + $0x10] sm:$0xff]  ;;  %v1174_v42 = vld [vmem:[%s2239_s11 + $0x88] sm:$0xff]  ;;  %v1035_v43 = vperm.slane %v1032_v28, 1 }
 0x143   : > { %1196 = vmatpush.msrb.mxu1 %v1159_v41 }
 0x144   : > { %v836_v46 = vadd.f32 %v835_v45, %v816_v44  ;;  %v1158_v45 = vld [vmem:[%s2239_s11 + $0x8] sm:$0xff] }
 0x145   : > { %1197 = vmatpush.msrb.mxu1 %v1158_v45 }
 0x146   : > { %v839_v47 = vmax.f32 %v836_v46, 0.0  ;;  %v1173_v46 = vld [vmem:[%s2239_s11 + $0x80] sm:$0xff] }
 0x147   : > { %1198 = vmatpush.msrb.mxu1 %v1157_v49 }
 0x148   : > { %946 = vmatmul.f32.vlgmr.msra.gmra.mxu1 %v839_v47  ;;  %986 = vmatmul.f32.vlgmr.msra.gmra.mxu3 %v839_v47 }
 0x149   : > { %1114 = vmatpush.msra.mxu3 %v1031_v0 }
 0x14b   : > { %1115 = vmatpush.msra.mxu3 %v1029_v1 }
 0x14d   : > { %1116 = vmatpush.msra.mxu3 %v1027_v2 }
 0x14f   : > { %1117 = vmatpush.msra.mxu3 %v1025_v3  ;;  %v1124_v3 = vld [vmem:[#allocation2] sm:$0x3] }
 0x1bf   : > { %v927_v6 = vpop.f32.mrf.mxu0 }
 0x1c0   : > { %v928_v7 = vadd.f32 %v927_v6, %v906_v5 }
 0x1c5   : > { %v947_v8 = vpop.f32.mrf.mxu1  ;;  %v967_v11 = vpop.f32.mrf.mxu2 }
 0x1c6   : > { %v948_v9 = vadd.f32 %v947_v8, %v928_v7  ;;  %v968_v13 = vadd.f32 %v967_v11, %v907_v10 }
 0x1c8   : > { %v990_v12 = vmax.f32 %v948_v9, 0.0 }
 0x1ca   : > { %1058 = vmatmul.f32.vlgmr.msrb.gmra.mxu0 %v990_v12  ;;  %1098 = vmatmul.f32.vlgmr.msrb.gmra.mxu2 %v990_v12 }
 0x1cb   : > { %v987_v14 = vpop.f32.mrf.mxu3 }
 0x1cc   : > { %v988_v15 = vadd.f32 %v987_v14, %v968_v13 }
 0x1ce   : > { %v991_v16 = vmax.f32 %v988_v15, 0.0 }
 0x1d0   : > { %1351 = vmatmul.msk.f32.vlgmr.msrb.gmra.mxu3 %vm1038_vm0, %v991_v16 }
 0x1d1   : > { %1215 = vmatpush.msrb.mxu3 %v1176_v36 }
 0x1d3   : > { %1216 = vmatpush.msrb.mxu3 %v1175_v39 }
 0x1d5   : > { %1217 = vmatpush.msrb.mxu3 %v1174_v42 }
 0x1d7   : > { %1218 = vmatpush.msrb.mxu3 %v1173_v46 }
 0x1d8   : > { %1352 = vmatmul.msk.f32.vlgmr.msra.gmra.mxu3 %vm1038_vm0, %v991_v16 }
 0x247   : > { %v1059_v32 = vpop.f32.mrf.mxu0 }
 0x248   : > { %v1060_v34 = vadd.f32 %v1059_v32, %v1034_v30 }
 0x24d   : > { %v1099_v47 = vpop.f32.mrf.mxu2 }
 0x24e   : > { %v1100_v51 = vadd.f32 %v1099_v47, %v1035_v43 }
 0x253   : > { %v1079_v38 = vpop.f32.mrf.mxu3 }
 0x254   : > { %v1080_v40 = vadd.f32 %v1079_v38, %v1060_v34 }
 0x256   : > { %v1122_v44 = vmax.f32 %v1080_v40, 0.0 }
 0x258   : > { %v1126_v48 = vsel %vm1125_vm2, %v1122_v44, 0.0 }
 0x259   : > { %v1127_v50 = vrot.slane %v1126_v48, 4 }
 0x25b   : > { %v1119_v52 = vpop.f32.mrf.mxu3  ;;  %v1128_v54 = vadd.f32 %v1127_v50, %v1126_v48 }
 0x25c   : > { %v1120_v53 = vadd.f32 %v1119_v52, %v1100_v51 }
 0x25d   : > { %v1129_v57 = vrot.slane %v1128_v54, 2 }
 0x25e   : > { %v1123_v55 = vmax.f32 %v1120_v53, 0.0 }
 0x25f   : > { %v1130_v60 = vadd.f32 %v1129_v57, %v1128_v54 }
 0x260   : > { %v1134_v56 = vsel %vm1133_vm3, %v1123_v55, 0.0 }
 0x261   : > { %v1135_v58 = vrot.slane %v1134_v56, 4  ;;  %v1131_v63 = vrot.slane %v1130_v60, 1 }
 0x263   : > { %v1136_v59 = vadd.f32 %v1135_v58, %v1134_v56  ;;  %v1132_v2 = vadd.f32 %v1131_v63, %v1130_v60 }
 0x265   : > { %v1137_v61 = vrot.slane %v1136_v59, 2 }
 0x267   : > { %v1138_v62 = vadd.f32 %v1137_v61, %v1136_v59 }
 0x269   : > { %v1139_v0 = vrot.slane %v1138_v62, 1 }
 0x26b   : > { %v1140_v1 = vadd.f32 %v1139_v0, %v1138_v62 }
 0x26d   : > { %v1143_v4 = vrot.slane %v1140_v1, 7 }
 0x26f   : > { %v1145_v5 = vsel %vm1144_vm4, %v1132_v2, %v1143_v4 }
 0x270   : > { %v1147_v6 = vadd.f32 %v1145_v5, %v1124_v3 }
 0x272   : > { %1152 = vst.msk [vmem:[#allocation2] sm:$0x3] %vm2158_vm1, %v1147_v6 }
 0x279   : > { %v1156_v7 = vld [vmem:[#allocation2] sm:$0x3] }
 0x27a   : > { %v1178_v8 = vperm.slane %v1156_v7, 0  ;;  %v1179_v9 = vperm.slane %v1156_v7, 1 }
 0x27c   : > { %1199 = vmatmul.f32.vlgmr.msrb.gmra.mxu1 %v1178_v8  ;;  %1353 = vmatmul.msk.f32.vlgmr.msrb.gmra.mxu3 %vm1038_vm0, %v1179_v9 }
 0x2f9   : > { %v1200_v10 = vpop.f32.mrf.mxu1 }
 0x2ff   : > { %v1220_v11 = vpop.f32.mrf.mxu3 }
 0x300   : > { %v1221_v12 = vadd.f32 %v1220_v11, %v1200_v10 }
 0x302   : > { %1224 = vst.msk [vmem:[%s522_s27] sm:$0x1] %vm1223_vm5, %v1221_v12 }
 0x303 PF: > { %s24_s23 = sadd.s32 1, %s1494_s23   ;;  %s2245_s21 = smov %s1490_s22 }
 0x304   : > { %p21_p8 = scmp.ge.s32.totalorder %s24_s23, 4   ;;  %s2246_s22 = smov %s2248_s25 }
 0x306   :  { %23 = sbr.rel (!%p21_p8) target bundleno = 3 (0x3), region = 118 }
 0x30b   :  { %1250 = vsyncpa [#allocation4], 1 }
 0x30c   :  { %1252 = vsyncpa [#allocation4 + $0x1], 1 }
 0x30d   :  { %1253 = vsyncpa [#allocation6], 1 }

</bundles_post_ra>
